<compile_context>
chip_gen: v7x
topology: tpu7x:2x2x1
jax: 0.10.0
libtpu: 0.0.40
codegen_flags: <defaults>
</compile_context>

<pallas_src>
import functools

import jax
import jax.numpy as jnp
from jax import lax
from jax.experimental import pallas as pl
from jax.experimental.pallas import tpu as pltpu


def reward_mlp_kernel(s_ref, a_ref,              # activation tiles (bf16)
                      w1s_ref, w1a_ref, b1_ref,  # fc1 (W1 pre-split by rows)
                      w2_ref, b2_ref,            # fc2
                      w3_ref, b3_ref,            # fc3 (w3 as a (1, hidden) row)
                      out_ref):                  # (1, tile_b) lane-dense row
    # fc1: split matmul == concat([s, a]) @ W1   (bf16 in, f32 accumulate)
    h1 = jnp.dot(s_ref[...], w1s_ref[...], preferred_element_type=jnp.float32)
    h1 = h1 + jnp.dot(a_ref[...], w1a_ref[...],
                      preferred_element_type=jnp.float32)
    h1 = jnp.maximum(h1 + b1_ref[...], 0.0)                      # relu (f32 VPU)
    # fc2 (cast activations back to bf16 for the MXU, accumulate f32)
    h2 = jnp.dot(h1.astype(jnp.bfloat16), w2_ref[...],
                 preferred_element_type=jnp.float32)
    h2 = jnp.maximum(h2 + b2_ref[...], 0.0)                      # relu (f32 VPU)
    # fc3: (1, hidden) contracted against (tile_b, hidden) on the last dim
    # (q @ k^T style) -> (1, tile_b).  This yields the lane-dense output row
    # directly (no (tile_b, 1) column, no masked stores, no XLU transpose);
    # the MXU has plenty of slack at hidden=32.
    r = lax.dot_general(w3_ref[...], h2,
                        dimension_numbers=(((1,), (1,)), ((), ())),
                        preferred_element_type=jnp.float32)
    out_ref[...] = (r + b3_ref[...]).astype(out_ref.dtype)        # (1, tile_b)


def _pick_tile_b(batch):
    """Default batch tile: multiple of 128, <= 8192 rows, >= 2 grid steps
    once the batch is big enough (megacore split / pipeline overlap)."""
    b128 = 128 * pl.cdiv(batch, 128)
    if b128 <= 256:
        return b128                        # single step for tiny batches
    # ~8192 bf16 rows of the concat input ~= 0.5 MB / step: amortizes the
    # per-step overhead on every generation (v5e break-even ~0.3 MB).
    return min(8192, 128 * pl.cdiv(pl.cdiv(batch, 2), 128))


@functools.partial(jax.jit, static_argnames=("tile_b",))
def reward_model_forward(states, actions, params, tile_b=None):
    """Pallas equivalent of RewardModel.forward(states, actions) -> (B,)."""
    B, state_dim = states.shape
    _, action_dim = actions.shape
    w1, b1, w2, b2, w3, b3 = params
    hidden = w1.shape[1]

    # Stream the dominant HBM traffic as bf16; accumulation stays f32.
    states = states.astype(jnp.bfloat16)
    actions = actions.astype(jnp.bfloat16)
    # Split W1 once so the kernel never concatenates [states, actions].
    w1_s = w1[:state_dim].astype(jnp.bfloat16)     # (state_dim, hidden)
    w1_a = w1[state_dim:].astype(jnp.bfloat16)     # (action_dim, hidden)
    w2_b = w2.astype(jnp.bfloat16)

    if tile_b is None:
        tile_b = _pick_tile_b(B)
    tile_b = 128 * pl.cdiv(tile_b, 128)    # lane-dense output needs 128-multiples
    grid_b = pl.cdiv(B, tile_b)
    B_pad = grid_b * tile_b
    if B_pad != B:
        pad = ((0, B_pad - B), (0, 0))
        states = jnp.pad(states, pad)
        actions = jnp.pad(actions, pad)

    act_spec = lambda d: pl.BlockSpec((tile_b, d), lambda i: (i, 0))
    res_spec = lambda shape: pl.BlockSpec(shape, lambda i: (0, 0))  # resident

    out = pl.pallas_call(
        reward_mlp_kernel,
        out_shape=jax.ShapeDtypeStruct((1, B_pad), jnp.float32),
        grid=(grid_b,),
        in_specs=[
            act_spec(state_dim),                 # states tile       (bf16)
            act_spec(action_dim),                # actions tile      (bf16)
            res_spec((state_dim, hidden)),       # W1 state rows     (bf16)
            res_spec((action_dim, hidden)),      # W1 action rows    (bf16)
            res_spec((1, hidden)),               # b1                (f32)
            res_spec((hidden, hidden)),          # W2                (bf16)
            res_spec((1, hidden)),               # b2                (f32)
            res_spec((1, hidden)),               # w3 row            (f32)
            res_spec((1, 1)),                    # b3                (f32)
        ],
        out_specs=pl.BlockSpec((1, tile_b), lambda i: (0, i)),   # lane-dense
        compiler_params=pltpu.CompilerParams(
            dimension_semantics=("parallel",),       # split batch over TCs
            vmem_limit_bytes=32 * 1024 * 1024),      # v5e: raise 16MiB default
    )(states, actions,
      w1_s, w1_a, b1.reshape(1, hidden),
      w2_b, b2.reshape(1, hidden),
      w3.reshape(1, hidden), b3.reshape(1, 1))

    # PyTorch .squeeze(dim=1): -> (B,); drop any padded batch columns.
    return out[0, :B]


def init_params(key, in_size, hidden_size):
    """nn.Linear-style init (uniform +/- 1/sqrt(fan_in)); weights stored
    as (in_features, out_features)."""
    def linear(key, fan_in, fan_out):
        kw, kb = jax.random.split(key)
        bound = 1.0 / jnp.sqrt(fan_in)
        w = jax.random.uniform(kw, (fan_in, fan_out), jnp.float32, -bound, bound)
        b = jax.random.uniform(kb, (fan_out,), jnp.float32, -bound, bound)
        return w, b

    k1, k2, k3 = jax.random.split(key, 3)
    w1, b1 = linear(k1, in_size, hidden_size)
    w2, b2 = linear(k2, hidden_size, hidden_size)
    w3, b3 = linear(k3, hidden_size, 1)
    return (w1, b1, w2, b2, w3, b3)


def _reference(states, actions, params):
    w1, b1, w2, b2, w3, b3 = params
    inp = jnp.concatenate([states, actions], axis=-1)
    h = jnp.maximum(inp @ w1 + b1, 0.0)
    h = jnp.maximum(h @ w2 + b2, 0.0)
    return (h @ w3 + b3)[:, 0]


if __name__ == "__main__":
    # Shapes implied by the forward pass:
    #   states (B, state_dim), actions (B, action_dim), in_size = state_dim + action_dim
    B, state_dim, action_dim, hidden = 8, 24, 8, 32
    in_size = state_dim + action_dim

    key = jax.random.PRNGKey(0)
    k_s, k_a, k_p = jax.random.split(key, 3)
    states = jax.random.normal(k_s, (B, state_dim), jnp.float32)
    actions = jax.random.normal(k_a, (B, action_dim), jnp.float32)
    params = init_params(k_p, in_size, hidden)

    reward = reward_model_forward(states, actions, params)
    jax.block_until_ready(reward)
    ref = _reference(states, actions, params)
    assert reward.shape == (B,)
    # bf16-streamed inputs (f32 accumulate): tolerance loosened per review.
    assert jnp.allclose(reward, ref, atol=3e-2, rtol=3e-2)

    # Second check: non-aligned batch with a small (128-row) tile so the grid
    # takes multiple steps and the batch-padding path is exercised.
    B2 = 300
    k_s2, k_a2 = jax.random.split(jax.random.PRNGKey(1))
    states2 = jax.random.normal(k_s2, (B2, state_dim), jnp.float32)
    actions2 = jax.random.normal(k_a2, (B2, action_dim), jnp.float32)
    reward2 = reward_model_forward(states2, actions2, params, tile_b=128)
    jax.block_until_ready(reward2)
    ref2 = _reference(states2, actions2, params)
    assert reward2.shape == (B2,)
    assert jnp.allclose(reward2, ref2, atol=3e-2, rtol=3e-2)

    print("KERNEL_OK")
</pallas_src>

<mosaic_0001>
module attributes {stable_mosaic.version = 11 : i64} {
  func.func @reward_mlp_kernel(%arg0: i32, %arg1: memref<128x24xbf16, #tpu.memory_space<vmem>>, %arg2: memref<128x8xbf16, #tpu.memory_space<vmem>>, %arg3: memref<24x32xbf16, #tpu.memory_space<vmem>>, %arg4: memref<8x32xbf16, #tpu.memory_space<vmem>>, %arg5: memref<1x32xf32, #tpu.memory_space<vmem>>, %arg6: memref<32x32xbf16, #tpu.memory_space<vmem>>, %arg7: memref<1x32xf32, #tpu.memory_space<vmem>>, %arg8: memref<1x32xf32, #tpu.memory_space<vmem>>, %arg9: memref<1x1xf32, #tpu.memory_space<vmem>>, %arg10: memref<1x128xf32, #tpu.memory_space<vmem>>) attributes {dimension_semantics = [#tpu.dimension_semantics<parallel>], iteration_bounds = array<i64: 1>, scalar_prefetch = 0 : i64, scratch_operands = 0 : i64, tpu.core_type = #tpu.core_type<tc>, window_params = [{transform_indices = @transform_0, window_bounds = array<i64: 128, 24>}, {transform_indices = @transform_1, window_bounds = array<i64: 128, 8>}, {pipeline_mode = #tpu.pipeline_mode<synchronous>, transform_indices = @transform_2, window_bounds = array<i64: 24, 32>}, {pipeline_mode = #tpu.pipeline_mode<synchronous>, transform_indices = @transform_3, window_bounds = array<i64: 8, 32>}, {pipeline_mode = #tpu.pipeline_mode<synchronous>, transform_indices = @transform_4, window_bounds = array<i64: 1, 32>}, {pipeline_mode = #tpu.pipeline_mode<synchronous>, transform_indices = @transform_5, window_bounds = array<i64: 32, 32>}, {pipeline_mode = #tpu.pipeline_mode<synchronous>, transform_indices = @transform_6, window_bounds = array<i64: 1, 32>}, {pipeline_mode = #tpu.pipeline_mode<synchronous>, transform_indices = @transform_7, window_bounds = array<i64: 1, 32>}, {pipeline_mode = #tpu.pipeline_mode<synchronous>, transform_indices = @transform_8, window_bounds = array<i64: 1, 1>}, {transform_indices = @transform_9, window_bounds = array<i64: 1, 128>}]} {
    %c0 = arith.constant 0 : index
    %c0_0 = arith.constant 0 : index
    %0 = vector.load %arg1[%c0, %c0_0] : memref<128x24xbf16, #tpu.memory_space<vmem>>, vector<128x24xbf16>
    %c0_1 = arith.constant 0 : index
    %c0_2 = arith.constant 0 : index
    %1 = vector.load %arg3[%c0_1, %c0_2] : memref<24x32xbf16, #tpu.memory_space<vmem>>, vector<24x32xbf16>
    %cst = arith.constant dense<0.000000e+00> : vector<128x32xf32>
    %2 = tpu.matmul %0, %1, %cst {dimension_numbers = #tpu.dot_dimension_numbers<[1], [0], [0], [1], [0, 0, 1, 1], [], []>} : vector<128x24xbf16>, vector<24x32xbf16>, vector<128x32xf32> -> vector<128x32xf32>
    %c0_3 = arith.constant 0 : index
    %c0_4 = arith.constant 0 : index
    %3 = vector.load %arg2[%c0_3, %c0_4] : memref<128x8xbf16, #tpu.memory_space<vmem>>, vector<128x8xbf16>
    %c0_5 = arith.constant 0 : index
    %c0_6 = arith.constant 0 : index
    %4 = vector.load %arg4[%c0_5, %c0_6] : memref<8x32xbf16, #tpu.memory_space<vmem>>, vector<8x32xbf16>
    %cst_7 = arith.constant dense<0.000000e+00> : vector<128x32xf32>
    %5 = tpu.matmul %3, %4, %cst_7 {dimension_numbers = #tpu.dot_dimension_numbers<[1], [0], [0], [1], [0, 0, 1, 1], [], []>} : vector<128x8xbf16>, vector<8x32xbf16>, vector<128x32xf32> -> vector<128x32xf32>
    %6 = arith.addf %2, %5 : vector<128x32xf32>
    %c0_8 = arith.constant 0 : index
    %c0_9 = arith.constant 0 : index
    %7 = vector.load %arg5[%c0_8, %c0_9] : memref<1x32xf32, #tpu.memory_space<vmem>>, vector<1x32xf32>
    %8 = vector.broadcast %7 : vector<1x32xf32> to vector<128x32xf32>
    %9 = arith.addf %6, %8 : vector<128x32xf32>
    %cst_10 = arith.constant 0.000000e+00 : f32
    %10 = vector.broadcast %cst_10 : f32 to vector<128x32xf32>
    %11 = arith.maximumf %9, %10 : vector<128x32xf32>
    %12 = arith.truncf %11 : vector<128x32xf32> to vector<128x32xbf16>
    %c0_11 = arith.constant 0 : index
    %c0_12 = arith.constant 0 : index
    %13 = vector.load %arg6[%c0_11, %c0_12] : memref<32x32xbf16, #tpu.memory_space<vmem>>, vector<32x32xbf16>
    %cst_13 = arith.constant dense<0.000000e+00> : vector<128x32xf32>
    %14 = tpu.matmul %12, %13, %cst_13 {dimension_numbers = #tpu.dot_dimension_numbers<[1], [0], [0], [1], [0, 0, 1, 1], [], []>} : vector<128x32xbf16>, vector<32x32xbf16>, vector<128x32xf32> -> vector<128x32xf32>
    %c0_14 = arith.constant 0 : index
    %c0_15 = arith.constant 0 : index
    %15 = vector.load %arg7[%c0_14, %c0_15] : memref<1x32xf32, #tpu.memory_space<vmem>>, vector<1x32xf32>
    %16 = vector.broadcast %15 : vector<1x32xf32> to vector<128x32xf32>
    %17 = arith.addf %14, %16 : vector<128x32xf32>
    %cst_16 = arith.constant 0.000000e+00 : f32
    %18 = vector.broadcast %cst_16 : f32 to vector<128x32xf32>
    %19 = arith.maximumf %17, %18 : vector<128x32xf32>
    %c0_17 = arith.constant 0 : index
    %c0_18 = arith.constant 0 : index
    %20 = vector.load %arg8[%c0_17, %c0_18] : memref<1x32xf32, #tpu.memory_space<vmem>>, vector<1x32xf32>
    %cst_19 = arith.constant dense<0.000000e+00> : vector<1x128xf32>
    %21 = tpu.matmul %20, %19, %cst_19 {dimension_numbers = #tpu.dot_dimension_numbers<[1], [1], [0], [0], [0, 0, 1, 0], [], []>} : vector<1x32xf32>, vector<128x32xf32>, vector<1x128xf32> -> vector<1x128xf32>
    %c0_20 = arith.constant 0 : index
    %c0_21 = arith.constant 0 : index
    %22 = vector.load %arg9[%c0_20, %c0_21] : memref<1x1xf32, #tpu.memory_space<vmem>>, vector<1x1xf32>
    %23 = vector.broadcast %22 : vector<1x1xf32> to vector<1x128xf32>
    %24 = arith.addf %21, %23 : vector<1x128xf32>
    %c0_22 = arith.constant 0 : index
    %c0_23 = arith.constant 0 : index
    %25 = vector.load %arg10[%c0_22, %c0_23] : memref<1x128xf32, #tpu.memory_space<vmem>>, vector<1x128xf32>
    tpu.vector_store %arg10[%c0_22, %c0_23], %24 {strides = array<i32>} : memref<1x128xf32, #tpu.memory_space<vmem>>, vector<1x128xf32>,
    return
  }
  func.func @transform_0(%arg0: i32) -> (i32, i32) {
    %c0_i32 = arith.constant 0 : i32
    %c0_i32_0 = arith.constant 0 : i32
    return %arg0, %c0_i32 : i32, i32
  }
  func.func @transform_1(%arg0: i32) -> (i32, i32) {
    %c0_i32 = arith.constant 0 : i32
    %c0_i32_0 = arith.constant 0 : i32
    return %arg0, %c0_i32 : i32, i32
  }
  func.func @transform_2(%arg0: i32) -> (i32, i32) {
    %c0_i32 = arith.constant 0 : i32
    %c0_i32_0 = arith.constant 0 : i32
    %c0_i32_1 = arith.constant 0 : i32
    return %c0_i32, %c0_i32_0 : i32, i32
  }
  func.func @transform_3(%arg0: i32) -> (i32, i32) {
    %c0_i32 = arith.constant 0 : i32
    %c0_i32_0 = arith.constant 0 : i32
    %c0_i32_1 = arith.constant 0 : i32
    return %c0_i32, %c0_i32_0 : i32, i32
  }
  func.func @transform_4(%arg0: i32) -> (i32, i32) {
    %c0_i32 = arith.constant 0 : i32
    %c0_i32_0 = arith.constant 0 : i32
    %c0_i32_1 = arith.constant 0 : i32
    return %c0_i32, %c0_i32_0 : i32, i32
  }
  func.func @transform_5(%arg0: i32) -> (i32, i32) {
    %c0_i32 = arith.constant 0 : i32
    %c0_i32_0 = arith.constant 0 : i32
    %c0_i32_1 = arith.constant 0 : i32
    return %c0_i32, %c0_i32_0 : i32, i32
  }
  func.func @transform_6(%arg0: i32) -> (i32, i32) {
    %c0_i32 = arith.constant 0 : i32
    %c0_i32_0 = arith.constant 0 : i32
    %c0_i32_1 = arith.constant 0 : i32
    return %c0_i32, %c0_i32_0 : i32, i32
  }
  func.func @transform_7(%arg0: i32) -> (i32, i32) {
    %c0_i32 = arith.constant 0 : i32
    %c0_i32_0 = arith.constant 0 : i32
    %c0_i32_1 = arith.constant 0 : i32
    return %c0_i32, %c0_i32_0 : i32, i32
  }
  func.func @transform_8(%arg0: i32) -> (i32, i32) {
    %c0_i32 = arith.constant 0 : i32
    %c0_i32_0 = arith.constant 0 : i32
    %c0_i32_1 = arith.constant 0 : i32
    return %c0_i32, %c0_i32_0 : i32, i32
  }
  func.func @transform_9(%arg0: i32) -> (i32, i32) {
    %c0_i32 = arith.constant 0 : i32
    %c0_i32_0 = arith.constant 0 : i32
    return %c0_i32, %arg0 : i32, i32
  }
}

</mosaic_0001>

<bundles_post_ra>
// kernel: reward_model_forward.1
= control target key start
LH: loop header
LB: loop body
LE: loop exit
PB: predicated region body
PF: predicated region fallthrough
CT: control target
= control target key end

     0   :  { %vm136_vm0 = vcmask 1043456   ;;  %vm111_vm1 = vcmask 64512   ;;  %vm286_vm2 = vcmask 195584   ;;  %vm481_vm3 = vcmask 261120   ;;  %s1224_s3 = inlined_call_operand.vmem [shape: bf16[8,32], index: 3, kind: input, shape index: {}]   ;;  %s1225_s1 = inlined_call_operand.vmem [shape: bf16[128,8], index: 1, kind: input, shape index: {}]   ;;  %s1226_s2 = inlined_call_operand.vmem [shape: bf16[24,32], index: 2, kind: input, shape index: {}]   ;;  %s1227_s0 = inlined_call_operand.vmem [shape: bf16[128,24], index: 0, kind: input, shape index: {}]   ;;  %s1228_s5 = inlined_call_operand.vmem [shape: bf16[32,32], index: 5, kind: input, shape index: {}]   ;;  %s1229_s4 = inlined_call_operand.vmem [shape: f32[1,32], index: 4, kind: input, shape index: {}]   ;;  %s1230_s8 = inlined_call_operand.<no memory space> [shape: f32[1,1], index: 8, kind: input, shape index: {}]   ;;  %s1231_s6 = inlined_call_operand.vmem [shape: f32[1,32], index: 6, kind: input, shape index: {}]   ;;  %s1232_s7 = inlined_call_operand.vmem [shape: f32[1,32], index: 7, kind: input, shape index: {}]   ;;  %s1233_s9 = inlined_call_operand.vmem [shape: f32[1,128], index: 9, kind: output, shape index: {}]  }
   0x1   :  { %v70_v0 = vld [vmem:[%s1224_s3] sm:$0xf]  ;;  %v1014_v3 = vld [vmem:[%s1225_s1 + $0x8] sm:$0xff]   ;;  %v1016_v5 = vld [vmem:[%s1225_s1 + $0x10] sm:$0xff]   ;;  %vm1034_vm4 = vmmov 0  }
   0x2   :  { %1006 = vmatprep.subr.msk.bf16.mxu0 %vm136_vm0, %v70_v0  ;;  %v138_v1 = vsel %vm136_vm0, %v70_v0, 0  ;;  %v1013_v2 = vld [vmem:[%s1225_s1] sm:$0xff]   ;;  %v1020_v6 = vld [vmem:[%s1226_s2 + $0x8] ss:$0 sps:$4 sm:$0xff]   ;;  %v1017_v7 = vld [vmem:[%s1225_s1 + $0x18] sm:$0xff]  }
   0x3   :  { %866 = vmatpush3.bf16.msra.mxu0 %v138_v1  ;;  %867 = vmatprep.mubr.msk.bf16.mxu0 %vm111_vm1, %v1013_v2  ;;  %v1015_v4 = vld [vmem:[%s1226_s2] sm:$0xff]   ;;  %v312_v8 = vsel %vm136_vm0, %v1020_v6, 0  ;;  %v1019_v10 = vld [vmem:[%s1225_s1 + $0x28] sm:$0xff]   ;;  %v1021_v11 = vld [vmem:[%s1225_s1 + $0x30] sm:$0xff]  }
   0x4   :  { %883 = vmatprep.subr.bf16.mxu0 %v1015_v4  ;;  %v1018_v9 = vld [vmem:[%s1225_s1 + $0x20] sm:$0xff]   ;;  %v1022_v12 = vld [vmem:[%s1225_s1 + $0x38] sm:$0xff]   ;;  %v1024_v14 = vld [vmem:[%s1227_s0 + $0x8] sm:$0xff]  }
   0x5   :  { %v1023_v13 = vld [vmem:[%s1227_s0] sm:$0xff]   ;;  %v1025_v15 = vld [vmem:[%s1227_s0 + $0x10] sm:$0xff]   ;;  %v1026_v16 = vld [vmem:[%s1227_s0 + $0x18] sm:$0xff]  }
   0x6   :  { %868 = vmatmul.mubr.msk.bf16.vlgmr.msra.gmra.mrb[0].mxu0 %vm111_vm1, %v1014_v3  ;;  %v1027_v17 = vld [vmem:[%s1227_s0 + $0x20] sm:$0xff]   ;;  %v1028_v18 = vld [vmem:[%s1227_s0 + $0x28] sm:$0xff]   ;;  %v1029_v19 = vld [vmem:[%s1227_s0 + $0x30] sm:$0xff]  }
   0x7   :  { %884 = vmatpush3.bf16.msra.mxu0 %v1015_v4  ;;  %871 = vmatprep.mubr.msk.bf16.mxu0 %vm111_vm1, %v1016_v5  ;;  %v1030_v20 = vld [vmem:[%s1227_s0 + $0x38] sm:$0xff]   ;;  %v1031_v21 = vld [vmem:[%s1228_s5] sm:$0xff]   ;;  %v1032_v22 = vld [vmem:[%s1228_s5 + $0x8] sm:$0xff]  }
   0x8   :  { %1007 = vmatprep.subr.msk.bf16.mxu0 %vm136_vm0, %v1020_v6  ;;  %903 = vmatprep.subr.bf16.mxu1 %v1031_v21  ;;  %v790_v23 = vld [vmem:[%s1229_s4] ss:$0 sm:$0xff]  ;;  %vm1190_vm5 = vmpackc.low %vm481_vm3, %vm481_vm3 }
   0x9   :  { %904 = vmatpush3.bf16.msra.mxu1 %v1031_v21  ;;  %v791_v21 = vld [vmem:[%s1231_s6] ss:$0 sm:$0xff] }
   0xa   :  { %905 = vmatprep.subr.bf16.mxu1 %v1032_v22 }
   0xb   :  { %886 = vmatpush3.bf16.msra.mxu0 %v312_v8 }
   0xd   :  { %906 = vmatpush3.bf16.msra.mxu1 %v1032_v22 }
   0xe   :  { %872 = vmatmul.mubr.msk.bf16.gmra.mrb[4].mxu0 %vm111_vm1, %v1017_v7 }
   0xf   :  { %875 = vmatprep.mubr.msk.bf16.mxu0 %vm111_vm1, %v1018_v9 }
  0x16   :  { %876 = vmatmul.mubr.msk.bf16.gmra.mrb[8].mxu0 %vm111_vm1, %v1019_v10 }
  0x17   :  { %879 = vmatprep.mubr.msk.bf16.mxu0 %vm111_vm1, %v1021_v11 }
  0x1e   :  { %880 = vmatmul.mubr.msk.bf16.gmra.mrb[12].mxu0 %vm111_vm1, %v1022_v12 }
  0x1f   :  { %887 = vmatprep.mubr.msk.bf16.mxu0 %vm286_vm2, %v1023_v13 }
  0x26   :  { %888 = vmatmul.mubr.msk.bf16.vlgmr.msra.gmra.mrb[0].mxu0 %vm286_vm2, %v1024_v14 }
  0x27   :  { %891 = vmatprep.mubr.msk.bf16.mxu0 %vm286_vm2, %v1025_v15 }
  0x2e   :  { %892 = vmatmul.mubr.msk.bf16.gmra.mrb[4].mxu0 %vm286_vm2, %v1026_v16  ;;  %v1033_v16 = vmov 0.0|0.0  }
  0x2f   :  { %895 = vmatprep.mubr.msk.bf16.mxu0 %vm286_vm2, %v1027_v17  ;;  %958 = vmatprep.subr.bf16.mxu1 %v1033_v16  ;;  %v1035_v17 = vmov 0.0  }
  0x36   :  { %896 = vmatmul.mubr.msk.bf16.gmra.mrb[8].mxu0 %vm286_vm2, %v1028_v18  ;;  %v1036_v18 = vmov 0  }
  0x37   :  { %899 = vmatprep.mubr.msk.bf16.mxu0 %vm286_vm2, %v1029_v19  ;;  %1012 = vset.pattern.permute.xlu0 %v1036_v18  ;;  %v14_v19 = vstv %s1230_s8 }
  0x38   :  { %15 = vst [vmem:[#allocation2] sm:$0x1] %v14_v19 }
  0x3e   :  { %900 = vmatmul.mubr.msk.bf16.gmra.mrb[12].mxu0 %vm286_vm2, %v1030_v20 }
  0x3f   :  { %v620_v20 = vld [vmem:[#allocation2] sm:$0x1] }
  0x40   :  { %623 = vperm.xlu0 %1012, %v620_v20  }
  0xbf   :  { %v624_v20 = vpop.permute.xlu0 %623 }
  0xf9   :  { %v889_v24 = vpop.f32.mrb[0].mxu0 }
  0xfa   :  { %v420_v25 = vadd.f32 %v889_v24, %v790_v23  ;;  %v348_v26 = vpop.f32.mrb[1].mxu0 }
  0xfb   :  { %v418_v27 = vadd.f32 %v790_v23, %v348_v26  ;;  %v890_v28 = vpop.f32.mrb[2].mxu0 }
  0xfc   :  { %v421_v29 = vadd.f32 %v890_v28, %v790_v23  ;;  %v351_v30 = vpop.f32.mrb[3].mxu0  ;;  %v436_v32 = vmax.f32 %v420_v25, 0.0 }
  0xfd   :  { %v419_v31 = vadd.f32 %v790_v23, %v351_v30  ;;  %v434_v34 = vmax.f32 %v418_v27, 0.0 }
  0xfe   :  { %v437_v33 = vmax.f32 %v421_v29, 0.0 }
  0xff   :  { %v435_v35 = vmax.f32 %v419_v31, 0.0 }
 0x100   :  { %v451_v36 = vpack.c.bf16 %v437_v33, %v436_v32 }
 0x101   :  { %v893_v37 = vpop.f32.mrb[4].mxu0  ;;  %v450_v38 = vpack.c.bf16 %v435_v35, %v434_v34 }
 0x102   :  { %v424_v39 = vadd.f32 %v893_v37, %v790_v23  ;;  %v364_v40 = vpop.f32.mrb[5].mxu0 }
 0x103   :  { %v422_v41 = vadd.f32 %v790_v23, %v364_v40  ;;  %v894_v42 = vpop.f32.mrb[6].mxu0  ;;  %907 = vmatprep.mubr.msk.bf16.mxu1 %vm481_vm3, %v450_v38 }
 0x104   :  { %v425_v43 = vadd.f32 %v894_v42, %v790_v23  ;;  %v367_v44 = vpop.f32.mrb[7].mxu0  ;;  %908 = vmatmul.mubr.msk.bf16.vlgmr.msra.gmra.mrb[0].mxu1 %vm481_vm3, %v451_v36  ;;  %v440_v46 = vmax.f32 %v424_v39, 0.0 }
 0x105   :  { %v423_v45 = vadd.f32 %v790_v23, %v367_v44  ;;  %v438_v48 = vmax.f32 %v422_v41, 0.0 }
 0x106   :  { %v441_v47 = vmax.f32 %v425_v43, 0.0 }
 0x107   :  { %v439_v49 = vmax.f32 %v423_v45, 0.0 }
 0x108   :  { %v453_v50 = vpack.c.bf16 %v441_v47, %v440_v46 }
 0x109   :  { %v452_v51 = vpack.c.bf16 %v439_v49, %v438_v48  ;;  %v897_v52 = vpop.f32.mrb[8].mxu0 }
 0x10a   :  { %v428_v53 = vadd.f32 %v897_v52, %v790_v23  ;;  %v380_v54 = vpop.f32.mrb[9].mxu0 }
 0x10b   :  { %v426_v55 = vadd.f32 %v790_v23, %v380_v54  ;;  %v898_v56 = vpop.f32.mrb[10].mxu0  ;;  %911 = vmatprep.mubr.msk.bf16.mxu1 %vm481_vm3, %v452_v51 }
 0x10c   :  { %v429_v57 = vadd.f32 %v898_v56, %v790_v23  ;;  %v383_v58 = vpop.f32.mrb[11].mxu0  ;;  %912 = vmatmul.mubr.msk.bf16.gmra.mrb[4].mxu1 %vm481_vm3, %v453_v50  ;;  %v444_v60 = vmax.f32 %v428_v53, 0.0 }
 0x10d   :  { %v427_v59 = vadd.f32 %v790_v23, %v383_v58  ;;  %v442_v62 = vmax.f32 %v426_v55, 0.0 }
 0x10e   :  { %v445_v61 = vmax.f32 %v429_v57, 0.0 }
 0x10f   :  { %v443_v63 = vmax.f32 %v427_v59, 0.0 }
 0x110   :  { %v455_v0 = vpack.c.bf16 %v445_v61, %v444_v60 }
 0x111   :  { %v454_v1 = vpack.c.bf16 %v443_v63, %v442_v62  ;;  %v901_v2 = vpop.f32.mrb[12].mxu0 }
 0x112   :  { %v432_v3 = vadd.f32 %v901_v2, %v790_v23  ;;  %v396_v4 = vpop.f32.mrb[13].mxu0 }
 0x113   :  { %v430_v5 = vadd.f32 %v790_v23, %v396_v4  ;;  %v902_v6 = vpop.f32.mrb[14].mxu0  ;;  %915 = vmatprep.mubr.msk.bf16.mxu1 %vm481_vm3, %v454_v1 }
 0x114   :  { %v433_v7 = vadd.f32 %v902_v6, %v790_v23  ;;  %v399_v8 = vpop.f32.mrb[15].mxu0  ;;  %916 = vmatmul.mubr.msk.bf16.gmra.mrb[8].mxu1 %vm481_vm3, %v455_v0  ;;  %v448_v10 = vmax.f32 %v432_v3, 0.0 }
 0x115   :  { %v431_v9 = vadd.f32 %v790_v23, %v399_v8  ;;  %v446_v12 = vmax.f32 %v430_v5, 0.0 }
 0x116   :  { %v449_v11 = vmax.f32 %v433_v7, 0.0 }
 0x117   :  { %v447_v13 = vmax.f32 %v431_v9, 0.0 }
 0x118   :  { %v457_v14 = vpack.c.bf16 %v449_v11, %v448_v10 }
 0x119   :  { %v456_v15 = vpack.c.bf16 %v447_v13, %v446_v12 }
 0x11b   :  { %919 = vmatprep.mubr.msk.bf16.mxu1 %vm481_vm3, %v456_v15  ;;  %v619_v15 = vld [vmem:[%s1232_s7] sm:$0x1] }
 0x11c   :  { %920 = vmatmul.mubr.msk.bf16.gmra.mrb[12].mxu1 %vm481_vm3, %v457_v14 }
 0x11d   :  { %955 = vmatprep.mubr.msk.f32.mxu1 %vm1034_vm4, %v1035_v17  ;;  %v626_v17 = vlaneseq }
 0x11f   :  { %v627_v18 = vshrl.u32 %v626_v17, 7 }
 0x121   :  { %v628_v19 = vsub.s32 0, %v627_v18 }
 0x1d7   :  { %v909_v22 = vpop.f32.mrb[0].mxu1 }
 0x1d8   :  { %v549_v23 = vadd.f32 %v909_v22, %v791_v21  ;;  %v540_v24 = vpop.f32.mrb[1].mxu1 }
 0x1d9   :  { %v541_v25 = vadd.f32 %v791_v21, %v540_v24  ;;  %v910_v26 = vpop.f32.mrb[2].mxu1 }
 0x1da   :  { %v552_v27 = vadd.f32 %v910_v26, %v791_v21  ;;  %v543_v28 = vpop.f32.mrb[3].mxu1  ;;  %v605_v30 = vmax.f32 %v549_v23, 0.0 }
 0x1db   :  { %v544_v29 = vadd.f32 %v791_v21, %v543_v28  ;;  %v603_v32 = vmax.f32 %v541_v25, 0.0 }
 0x1dc   :  { %v606_v31 = vmax.f32 %v552_v27, 0.0 }
 0x1dd   :  { %v604_v33 = vmax.f32 %v544_v29, 0.0 }
 0x1de   :  { %v963_v34 = vpack.c.bf16 %v606_v31, %v605_v30 }
 0x1df   :  { %v959_v36 = vpack.c.bf16 %v604_v33, %v603_v32  ;;  %v913_v37 = vpop.f32.mrb[4].mxu1 }
 0x1e0   :  { %v565_v38 = vadd.f32 %v913_v37, %v791_v21  ;;  %v556_v39 = vpop.f32.mrb[5].mxu1 }
 0x1e1   :  { %v557_v40 = vadd.f32 %v791_v21, %v556_v39  ;;  %v914_v41 = vpop.f32.mrb[6].mxu1  ;;  %961 = vmatpush3.bf16.xpose.msk.msra.mxu1 %vm1190_vm5, %v959_v36 }
 0x1e2   :  { %v568_v42 = vadd.f32 %v914_v41, %v791_v21  ;;  %v559_v43 = vpop.f32.mrb[7].mxu1  ;;  %962 = vmatprep.subr.bf16.mxu1 %v1033_v16  ;;  %v609_v45 = vmax.f32 %v565_v38, 0.0 }
 0x1e3   :  { %v560_v44 = vadd.f32 %v791_v21, %v559_v43  ;;  %v607_v47 = vmax.f32 %v557_v40, 0.0 }
 0x1e4   :  { %v610_v46 = vmax.f32 %v568_v42, 0.0 }
 0x1e5   :  { %v608_v48 = vmax.f32 %v560_v44, 0.0 }
 0x1e6   :  { %v971_v49 = vpack.c.bf16 %v610_v46, %v609_v45 }
 0x1e7   :  { %v967_v50 = vpack.c.bf16 %v608_v48, %v607_v47  ;;  %v917_v51 = vpop.f32.mrb[8].mxu1 }
 0x1e8   :  { %v581_v52 = vadd.f32 %v917_v51, %v791_v21  ;;  %v572_v53 = vpop.f32.mrb[9].mxu1 }
 0x1e9   :  { %v573_v54 = vadd.f32 %v791_v21, %v572_v53  ;;  %v918_v55 = vpop.f32.mrb[10].mxu1  ;;  %965 = vmatpush3.bf16.xpose.msk.msra.mxu1 %vm1190_vm5, %v963_v34 }
 0x1ea   :  { %v584_v56 = vadd.f32 %v918_v55, %v791_v21  ;;  %v575_v57 = vpop.f32.mrb[11].mxu1  ;;  %966 = vmatprep.subr.bf16.mxu1 %v1033_v16  ;;  %v613_v59 = vmax.f32 %v581_v52, 0.0 }
 0x1eb   :  { %v576_v58 = vadd.f32 %v791_v21, %v575_v57  ;;  %v611_v61 = vmax.f32 %v573_v54, 0.0 }
 0x1ec   :  { %v614_v60 = vmax.f32 %v584_v56, 0.0 }
 0x1ed   :  { %v612_v62 = vmax.f32 %v576_v58, 0.0 }
 0x1ee   :  { %v979_v63 = vpack.c.bf16 %v614_v60, %v613_v59 }
 0x1ef   :  { %v975_v0 = vpack.c.bf16 %v612_v62, %v611_v61  ;;  %v921_v1 = vpop.f32.mrb[12].mxu1 }
 0x1f0   :  { %v597_v2 = vadd.f32 %v921_v1, %v791_v21  ;;  %v588_v3 = vpop.f32.mrb[13].mxu1 }
 0x1f1   :  { %v589_v4 = vadd.f32 %v791_v21, %v588_v3  ;;  %v922_v5 = vpop.f32.mrb[14].mxu1  ;;  %969 = vmatpush3.bf16.xpose.msk.msra.mxu1 %vm1190_vm5, %v967_v50 }
 0x1f2   :  { %v600_v6 = vadd.f32 %v922_v5, %v791_v21  ;;  %v591_v7 = vpop.f32.mrb[15].mxu1  ;;  %970 = vmatprep.subr.bf16.mxu1 %v1033_v16  ;;  %v617_v9 = vmax.f32 %v597_v2, 0.0 }
 0x1f3   :  { %v592_v8 = vadd.f32 %v791_v21, %v591_v7  ;;  %v615_v11 = vmax.f32 %v589_v4, 0.0  ;;  %v629_v21 = vrot.slane %v624_v20, %v628_v19 }
 0x1f4   :  { %v618_v10 = vmax.f32 %v600_v6, 0.0 }
 0x1f5   :  { %v616_v12 = vmax.f32 %v592_v8, 0.0 }
 0x1f6   :  { %v987_v13 = vpack.c.bf16 %v618_v10, %v617_v9 }
 0x1f7   :  { %v983_v14 = vpack.c.bf16 %v616_v12, %v615_v11 }
 0x1f9   :  { %973 = vmatpush3.bf16.xpose.msk.msra.mxu1 %vm1190_vm5, %v971_v49 }
 0x1fa   :  { %974 = vmatprep.subr.bf16.mxu1 %v1033_v16 }
 0x201   :  { %977 = vmatpush3.bf16.xpose.msk.msra.mxu1 %vm1190_vm5, %v975_v0 }
 0x202   :  { %978 = vmatprep.subr.bf16.mxu1 %v1033_v16 }
 0x209   :  { %981 = vmatpush3.bf16.xpose.msk.msra.mxu1 %vm1190_vm5, %v979_v63 }
 0x20a   :  { %982 = vmatprep.subr.bf16.mxu1 %v1033_v16 }
 0x211   :  { %985 = vmatpush3.bf16.xpose.msk.msra.mxu1 %vm1190_vm5, %v983_v14 }
 0x212   :  { %986 = vmatprep.subr.bf16.mxu1 %v1033_v16 }
 0x219   :  { %989 = vmatpush3.bf16.xpose.msk.msra.mxu1 %vm1190_vm5, %v987_v13 }
 0x220   :  { %956 = vmatmul.mubr.msk.f32.vlgmr.msra.gmra.mrb[16].mxu1 %vm481_vm3, %v619_v15 }
 0x2f3   :  { %v747_v22 = vpop.f32.mrb[16].mxu1 }
 0x2f4   :  { %v748_v23 = vadd.f32 %v747_v22, %v629_v21  ;;  %v957_v24 = vpop.f32.mrb[17].mxu1 }
 0x2f6   :  { %751 = vst [vmem:[%s1233_s9] sm:$0x1] %v748_v23 }

</bundles_post_ra>
